<compile_context>
chip_gen: v5e
topology: v5e:2x2
jax: 0.10.0
libtpu: 0.0.40
codegen_flags: <defaults>
</compile_context>

<pallas_src>
import jax
import jax.numpy as jnp
from jax.experimental import pallas as pl
from jax.experimental.pallas import tpu as pltpu

BN_EPS = 1e-5
_INV_SQRT2 = 0.7071067811865476


def _round_up(a, m):
    return ((a + m - 1) // m) * m


def _make_kernel(mxu_dtype):
    def kernel(w_ref, xk_ref, scale_ref, bias_ref, xm_ref, o_ref, acc_ref):
        # grid = (n, m, k); k (contraction over seq) is the innermost axis.
        k = pl.program_id(2)

        @pl.when(k == 0)
        def _():
            acc_ref[...] = jnp.zeros_like(acc_ref)

        # BN affine (scale only; shift folded into bias_eff in the wrapper).
        y = xk_ref[...] * scale_ref[...]            # (tk, tn)
        lhs = w_ref[...]                            # (tm, tk)
        if mxu_dtype is not None:                   # optional bf16 MXU inputs
            y = y.astype(mxu_dtype)
            lhs = lhs.astype(mxu_dtype)
        acc_ref[...] += jnp.dot(lhs, y, preferred_element_type=jnp.float32)

        @pl.when(k == pl.num_programs(2) - 1)
        def _():
            z = acc_ref[...] + bias_ref[...]        # (tm, tn) + (tm, 1)
            # Exact-erf GELU (matches nn.GELU() default).
            g = 0.5 * z * (1.0 + jax.lax.erf(z * _INV_SQRT2))
            # Dropout = identity at inference; residual add; lane-dense store.
            o_ref[...] = (xm_ref[...] + g).astype(o_ref.dtype)

    return kernel


def t_mixer_block(x, w, b, mean, var, gamma, beta, *, mxu_dtype=None):
    """x: (B, S, C). w: (S, S). b/mean/var/gamma/beta: (S,).  Returns (B, S, C)."""
    B, S, C = x.shape
    N = B * C
    f32 = jnp.float32

    # Fold eval-mode BatchNorm into a per-seq scale + an effective bias:
    #   z = W @ (x*scale + shift) + b = W @ (x*scale) + (W @ shift + b)
    scale = gamma.astype(f32) * jax.lax.rsqrt(var.astype(f32) + BN_EPS)   # (S,)
    shift = beta.astype(f32) - mean.astype(f32) * scale                   # (S,)
    bias_eff = w.astype(f32) @ shift + b.astype(f32)                      # (S,)

    # Lane-dense layout: (S, B*C) so the MXU N dim and output stores are wide.
    x2 = jnp.transpose(x.astype(f32), (1, 0, 2)).reshape(S, N)

    # Tile selection (bounded so double-buffered VMEM stays tiny everywhere).
    tile_s = _round_up(S, 8) if S <= 512 else 256          # M and K tile
    S_pad = _round_up(S, tile_s)
    tn = min(256, _round_up(N, 128))                       # lane tile (>=128)
    N_pad = _round_up(N, tn)

    # Zero-pad (padded seq rows contribute 0 to the contraction; padded lanes
    # and padded output rows are sliced away afterwards).
    x2p = jnp.pad(x2, ((0, S_pad - S), (0, N_pad - N)))
    w_p = jnp.pad(w.astype(f32), ((0, S_pad - S), (0, S_pad - S)))
    if mxu_dtype is not None:
        w_p = w_p.astype(mxu_dtype)                        # halves W DMA bytes
    scale_p = jnp.pad(scale, (0, S_pad - S)).reshape(S_pad, 1)
    bias_p = jnp.pad(bias_eff, (0, S_pad - S)).reshape(S_pad, 1)

    grid = (N_pad // tn, S_pad // tile_s, S_pad // tile_s)  # (n, m, k); k last

    out2 = pl.pallas_call(
        _make_kernel(mxu_dtype),
        out_shape=jax.ShapeDtypeStruct((S_pad, N_pad), x.dtype),
        grid_spec=pltpu.PrefetchScalarGridSpec(
            num_scalar_prefetch=0,
            grid=grid,
            in_specs=[
                pl.BlockSpec((tile_s, tile_s), lambda n, m, k: (m, k)),  # W tile
                pl.BlockSpec((tile_s, tn), lambda n, m, k: (k, n)),      # x (K role)
                pl.BlockSpec((tile_s, 1), lambda n, m, k: (k, 0)),       # BN scale
                pl.BlockSpec((tile_s, 1), lambda n, m, k: (m, 0)),       # eff. bias
                pl.BlockSpec((tile_s, tn), lambda n, m, k: (m, n)),      # x (residual)
            ],
            out_specs=pl.BlockSpec((tile_s, tn), lambda n, m, k: (m, n)),
            scratch_shapes=[pltpu.VMEM((tile_s, tn), jnp.float32)],      # f32 acc
        ),
        compiler_params=pltpu.CompilerParams(
            dimension_semantics=("parallel", "parallel", "arbitrary"),
        ),
    )(w_p, x2p, scale_p, bias_p, x2p)

    out = out2[:S, :N].reshape(S, B, C).transpose(1, 0, 2)
    return out.astype(x.dtype)


def _reference(x, w, b, mean, var, gamma, beta):
    # Pure-JAX reference of the same (inference-mode) forward.
    scale = gamma / jnp.sqrt(var + BN_EPS)
    y = x * scale[None, :, None] + (beta - mean * scale)[None, :, None]
    z = jnp.einsum("ts,bsc->btc", w, y,
                   precision=jax.lax.Precision.HIGHEST) + b[None, :, None]
    g = 0.5 * z * (1.0 + jax.lax.erf(z * _INV_SQRT2))
    return x + g


# TODO(synk): training-mode BatchNorm batch statistics and stochastic Dropout are
# not implemented (eval-mode forward only, matching the fused-inference intent).

if __name__ == "__main__":
    key = jax.random.PRNGKey(0)

    def make_case(k, B, S, C):
        kx, kw, kb, km, kv, kg, kbe = jax.random.split(k, 7)
        x = jax.random.normal(kx, (B, S, C), dtype=jnp.float32)
        bound = 1.0 / float(S) ** 0.5
        w = jax.random.uniform(kw, (S, S), jnp.float32, -bound, bound)   # Linear.weight
        b = jax.random.uniform(kb, (S,), jnp.float32, -bound, bound)     # Linear.bias
        mean = 0.1 * jax.random.normal(km, (S,), jnp.float32)            # BN running_mean
        var = jnp.abs(jax.random.normal(kv, (S,), jnp.float32)) + 0.5    # BN running_var
        gamma = 1.0 + 0.1 * jax.random.normal(kg, (S,), jnp.float32)     # BN weight
        beta = 0.1 * jax.random.normal(kbe, (S,), jnp.float32)           # BN bias
        return (x, w, b, mean, var, gamma, beta)

    k1, k2 = jax.random.split(key)

    # Small case (single-block path): batch=2, seq_len=8, channels=16.
    args = make_case(k1, B=2, S=8, C=16)
    out = jax.block_until_ready(t_mixer_block(*args))
    ref = _reference(*args)
    assert out.shape == args[0].shape
    assert jnp.allclose(out, ref, atol=1e-5, rtol=1e-5), \
        float(jnp.max(jnp.abs(out - ref)))

    # Larger seq_len to exercise the tiled-contraction / accumulator path.
    args2 = make_case(k2, B=2, S=640, C=16)
    out2 = jax.block_until_ready(t_mixer_block(*args2))
    ref2 = _reference(*args2)
    assert jnp.allclose(out2, ref2, atol=1e-4, rtol=1e-4), \
        float(jnp.max(jnp.abs(out2 - ref2)))

    print("KERNEL_OK")
</pallas_src>

<mosaic_0001>
module attributes {stable_mosaic.version = 11 : i64} {
  func.func @kernel(%arg0: i32, %arg1: i32, %arg2: i32, %arg3: memref<8x8xf32, #tpu.memory_space<vmem>>, %arg4: memref<8x128xf32, #tpu.memory_space<vmem>>, %arg5: memref<8x1xf32, #tpu.memory_space<vmem>>, %arg6: memref<8x1xf32, #tpu.memory_space<vmem>>, %arg7: memref<8x128xf32, #tpu.memory_space<vmem>>, %arg8: memref<8x128xf32, #tpu.memory_space<vmem>>, %arg9: memref<8x128xf32, #tpu.memory_space<vmem>>) attributes {dimension_semantics = [#tpu.dimension_semantics<parallel>, #tpu.dimension_semantics<parallel>, #tpu.dimension_semantics<arbitrary>], iteration_bounds = array<i64: 1, 1, 1>, scalar_prefetch = 0 : i64, scratch_operands = 1 : i64, tpu.core_type = #tpu.core_type<tc>, window_params = [{transform_indices = @transform_0, window_bounds = array<i64: 8, 8>}, {transform_indices = @transform_1, window_bounds = array<i64: 8, 128>}, {transform_indices = @transform_2, window_bounds = array<i64: 8, 1>}, {transform_indices = @transform_3, window_bounds = array<i64: 8, 1>}, {transform_indices = @transform_4, window_bounds = array<i64: 8, 128>}, {transform_indices = @transform_5, window_bounds = array<i64: 8, 128>}]} {
    %c0_i32 = arith.constant 0 : i32
    %0 = arith.cmpi eq, %arg2, %c0_i32 : i32
    %1 = arith.extui %0 : i1 to i32
    %c0_i32_0 = arith.constant 0 : i32
    %2 = arith.cmpi ne, %1, %c0_i32_0 : i32
    scf.if %2 {
      %cst_12 = arith.constant 0.000000e+00 : f32
      %15 = vector.broadcast %cst_12 : f32 to vector<8x128xf32>
      %c0_13 = arith.constant 0 : index
      %c0_14 = arith.constant 0 : index
      %16 = vector.load %arg9[%c0_13, %c0_14] : memref<8x128xf32, #tpu.memory_space<vmem>>, vector<8x128xf32>
      tpu.vector_store %arg9[%c0_13, %c0_14], %15 {strides = array<i32>} : memref<8x128xf32, #tpu.memory_space<vmem>>, vector<8x128xf32>,
    } else {
    }
    %c0 = arith.constant 0 : index
    %c0_1 = arith.constant 0 : index
    %3 = vector.load %arg4[%c0, %c0_1] : memref<8x128xf32, #tpu.memory_space<vmem>>, vector<8x128xf32>
    %c0_2 = arith.constant 0 : index
    %c0_3 = arith.constant 0 : index
    %4 = vector.load %arg5[%c0_2, %c0_3] : memref<8x1xf32, #tpu.memory_space<vmem>>, vector<8x1xf32>
    %5 = vector.broadcast %4 : vector<8x1xf32> to vector<8x128xf32>
    %6 = arith.mulf %3, %5 : vector<8x128xf32>
    %c0_4 = arith.constant 0 : index
    %c0_5 = arith.constant 0 : index
    %7 = vector.load %arg3[%c0_4, %c0_5] : memref<8x8xf32, #tpu.memory_space<vmem>>, vector<8x8xf32>
    %c0_6 = arith.constant 0 : index
    %c0_7 = arith.constant 0 : index
    %8 = vector.load %arg9[%c0_6, %c0_7] : memref<8x128xf32, #tpu.memory_space<vmem>>, vector<8x128xf32>
    %cst = arith.constant dense<0.000000e+00> : vector<8x128xf32>
    %9 = tpu.matmul %7, %6, %cst {dimension_numbers = #tpu.dot_dimension_numbers<[1], [0], [0], [1], [0, 0, 1, 1], [], []>} : vector<8x8xf32>, vector<8x128xf32>, vector<8x128xf32> -> vector<8x128xf32>
    %10 = arith.addf %8, %9 : vector<8x128xf32>
    %c0_8 = arith.constant 0 : index
    %c0_9 = arith.constant 0 : index
    %11 = vector.load %arg9[%c0_8, %c0_9] : memref<8x128xf32, #tpu.memory_space<vmem>>, vector<8x128xf32>
    tpu.vector_store %arg9[%c0_8, %c0_9], %10 {strides = array<i32>} : memref<8x128xf32, #tpu.memory_space<vmem>>, vector<8x128xf32>,
    %c0_i32_10 = arith.constant 0 : i32
    %12 = arith.cmpi eq, %arg2, %c0_i32_10 : i32
    %13 = arith.extui %12 : i1 to i32
    %c0_i32_11 = arith.constant 0 : i32
    %14 = arith.cmpi ne, %13, %c0_i32_11 : i32
    scf.if %14 {
      %c0_12 = arith.constant 0 : index
      %c0_13 = arith.constant 0 : index
      %15 = vector.load %arg9[%c0_12, %c0_13] : memref<8x128xf32, #tpu.memory_space<vmem>>, vector<8x128xf32>
      %c0_14 = arith.constant 0 : index
      %c0_15 = arith.constant 0 : index
      %16 = vector.load %arg6[%c0_14, %c0_15] : memref<8x1xf32, #tpu.memory_space<vmem>>, vector<8x1xf32>
      %17 = vector.broadcast %16 : vector<8x1xf32> to vector<8x128xf32>
      %18 = arith.addf %15, %17 : vector<8x128xf32>
      %cst_16 = arith.constant 5.000000e-01 : f32
      %19 = vector.broadcast %cst_16 : f32 to vector<8x128xf32>
      %20 = arith.mulf %19, %18 : vector<8x128xf32>
      %cst_17 = arith.constant 0.707106769 : f32
      %21 = vector.broadcast %cst_17 : f32 to vector<8x128xf32>
      %22 = arith.mulf %18, %21 : vector<8x128xf32>
      %23 = math.erf %22 : vector<8x128xf32>
      %cst_18 = arith.constant 1.000000e+00 : f32
      %24 = vector.broadcast %cst_18 : f32 to vector<8x128xf32>
      %25 = arith.addf %24, %23 : vector<8x128xf32>
      %26 = arith.mulf %20, %25 : vector<8x128xf32>
      %c0_19 = arith.constant 0 : index
      %c0_20 = arith.constant 0 : index
      %27 = vector.load %arg7[%c0_19, %c0_20] : memref<8x128xf32, #tpu.memory_space<vmem>>, vector<8x128xf32>
      %28 = arith.addf %27, %26 : vector<8x128xf32>
      %c0_21 = arith.constant 0 : index
      %c0_22 = arith.constant 0 : index
      %29 = vector.load %arg8[%c0_21, %c0_22] : memref<8x128xf32, #tpu.memory_space<vmem>>, vector<8x128xf32>
      tpu.vector_store %arg8[%c0_21, %c0_22], %28 {strides = array<i32>} : memref<8x128xf32, #tpu.memory_space<vmem>>, vector<8x128xf32>,
    } else {
    }
    return
  }
  func.func @transform_0(%arg0: i32, %arg1: i32, %arg2: i32) -> (i32, i32) {
    %c0_i32 = arith.constant 0 : i32
    return %arg1, %arg2 : i32, i32
  }
  func.func @transform_1(%arg0: i32, %arg1: i32, %arg2: i32) -> (i32, i32) {
    %c0_i32 = arith.constant 0 : i32
    return %arg2, %arg0 : i32, i32
  }
  func.func @transform_2(%arg0: i32, %arg1: i32, %arg2: i32) -> (i32, i32) {
    %c0_i32 = arith.constant 0 : i32
    %c0_i32_0 = arith.constant 0 : i32
    return %arg2, %c0_i32 : i32, i32
  }
  func.func @transform_3(%arg0: i32, %arg1: i32, %arg2: i32) -> (i32, i32) {
    %c0_i32 = arith.constant 0 : i32
    %c0_i32_0 = arith.constant 0 : i32
    return %arg1, %c0_i32 : i32, i32
  }
  func.func @transform_4(%arg0: i32, %arg1: i32, %arg2: i32) -> (i32, i32) {
    %c0_i32 = arith.constant 0 : i32
    return %arg1, %arg0 : i32, i32
  }
  func.func @transform_5(%arg0: i32, %arg1: i32, %arg2: i32) -> (i32, i32) {
    %c0_i32 = arith.constant 0 : i32
    return %arg1, %arg0 : i32, i32
  }
}

</mosaic_0001>

<bundles_post_ra>
// kernel: tpu_custom_call.1
= control target key start
LH: loop header
LB: loop body
LE: loop exit
PB: predicated region body
PF: predicated region fallthrough
CT: control target
= control target key end

     0   :  { %10 = vsyncpa [#allocation4], 0  ;;  %s262_s0 = inlined_call_operand.vmem [shape: f32[8,8], index: 0, kind: input, shape index: {}]   ;;  %s263_s1 = inlined_call_operand.vmem [shape: f32[8,128], index: 1, kind: input, shape index: {}]   ;;  %s264_s2 = inlined_call_operand.vmem [shape: f32[8,1], index: 2, kind: input, shape index: {}]   ;;  %s265_s3 = inlined_call_operand.vmem [shape: f32[8,1], index: 3, kind: input, shape index: {}]   ;;  %s266_s4 = inlined_call_operand.hbm [shape: f32[8,128], index: 4, kind: input, shape index: {}]   ;;  %s267_s5 = inlined_call_operand.hbm [shape: f32[8,128], index: 5, kind: output, shape index: {}]  }
   0x1   :  { %11 = vsyncpa [#allocation5], 0  ;;  %s25_s20 = sshll.u32 %s266_s4, 4  ;;  %s211_s21 = smov [#allocation3]   ;;  %s26_s20 = int_to_ptr.hbm [resolvable:$true] %s25_s20 }
   0x2   :  { %s27_s22 = sshll.u32 %s211_s21, 4  ;;  %s28_s22 = int_to_ptr.vmem [resolvable:$true] %s27_s22 }
   0x3   :  { %30 = dma.hbm_to_vmem [thread:$0]  %s26_s20, 128, %s28_s22, [#allocation4]  }
   0x4   :  { %207 = dma.done.wait [#allocation4], 128  }
   0x5   :  { %208 = vsyncadd [#allocation4], 4294967168  ;;  %v212_v0 = vmov 0   ;;  %v41_v1 = vld [vmem:[%s264_s2] sm:$0xff]  ;;  %vm50_vm0 = vcmask 64512   ;;  %s141_s30 = sshll.u32 %s267_s5, 4  ;;  %s142_s30 = int_to_ptr.hbm [resolvable:$true] %s141_s30 }
   0x6   :  { %156 = vset.pattern.permute.xlu0 %v212_v0  ;;  %v80_v2 = vld [vmem:[%s265_s3] sm:$0xff] }
   0x7   :  { %44 = vperm.xlu0 %156, %v41_v1   ;;  %v40_v3 = vld [vmem:[%s263_s1] sm:$0xff] }
   0x8   :  { %v48_v6 = vld [vmem:[%s262_s0] sm:$0xff]  ;;  %s213_s0 = smov [#allocation6]  }
   0x9   :  { %v131_v48 = vld [vmem:[#allocation3] sm:$0xff]  ;;  %s139_s1 = sshll.u32 %s213_s0, 4  ;;  %s140_s1 = int_to_ptr.vmem [resolvable:$true] %s139_s1 }
   0xf   :  { %83 = vperm.xlu0 %156, %v80_v2  }
  0x79   :  { %v45_v4 = vpop.permute.xlu0 %44 }
  0x7a   :  { %v47_v5 = vmul.f32 %v45_v4, %v40_v3 }
  0x7c   :  { %69 = vmatpush.msra.mxu0 %v47_v5 }
  0x7d   :  { %151 = vmatmul.msk.f32.vlgmr.msra.gmra.mxu0 %vm50_vm0, %v48_v6 }
  0x81   :  { %v84_v7 = vpop.permute.xlu0 %83 }
  0xfa   :  { %v71_v8 = vpop.f32.mrf.mxu0 }
  0xfb   :  { %v86_v9 = vadd.f32 %v84_v7, %v71_v8 }
  0xfd   :  { %v88_v10 = vmul.f32 0.70710677, %v86_v9  ;;  %v87_v46 = vmul.f32 0.5, %v86_v9 }
  0xff   :  { %v89_v11 = vmul.f32 %v88_v10, %v88_v10 }
 0x101   :  { %v90_v12 = vmin.f32 %v89_v11, 16.0 }
 0x103   :  { %v91_v13 = vmul.f32 2.1237322e-06, %v90_v12  ;;  %v102_v14 = vmul.f32 3.8918573e-05, %v90_v12 }
 0x105   :  { %v92_v15 = vadd.f32 0.00028619796, %v91_v13  ;;  %v103_v16 = vadd.f32 0.001143296, %v102_v14 }
 0x107   :  { %v93_v17 = vmul.f32 %v92_v15, %v90_v12  ;;  %v104_v18 = vmul.f32 %v103_v16, %v90_v12 }
 0x109   :  { %v105_v19 = vadd.f32 0.014752088, %v104_v18  ;;  %v94_v20 = vadd.f32 0.0036580483, %v93_v17 }
 0x10b   :  { %v106_v21 = vmul.f32 %v105_v19, %v90_v12  ;;  %v95_v23 = vmul.f32 %v94_v20, %v90_v12 }
 0x10d   :  { %v107_v22 = vadd.f32 0.112945676, %v106_v21  ;;  %v96_v26 = vadd.f32 0.05243302, %v95_v23 }
 0x10f   :  { %v108_v24 = vmul.f32 %v107_v22, %v90_v12  ;;  %v97_v29 = vmul.f32 %v96_v26, %v90_v12 }
 0x111   :  { %v109_v25 = vadd.f32 0.4994258, %v108_v24  ;;  %v98_v30 = vadd.f32 0.18741608, %v97_v29 }
 0x113   :  { %v110_v27 = vmul.f32 %v109_v25, %v90_v12  ;;  %v99_v32 = vmul.f32 %v98_v30, %v90_v12 }
 0x115   :  { %v111_v28 = vadd.f32 1.0, %v110_v27  ;;  %v100_v36 = vadd.f32 1.1283791, %v99_v32 }
 0x117   :  { %157 = vrcp.f32 %v111_v28  ;;  %v123_v35 = vand.u32 2147483648, %v111_v28  ;;  %v121_v38 = vand.u32 2147483647, %v111_v28  ;;  %vm117_vm2 = vweird.f32 %v111_v28 }
 0x118   :  { %v101_v41 = vmul.f32 %v100_v36, %v88_v10 }
 0x119   :  { %v124_v40 = vor.u32 1.1754944e-38, %v123_v35  ;;  %vm122_vm4 = vcmp.eq.f32.partialorder %v121_v38, 8.507059e+37 }
 0x11d   :  { %v158_v31 = vpop.eup %157 }
 0x11e   :  { %v113_v33 = vmul.f32 %v158_v31, %v111_v28  ;;  %vm118_vm1 = vweird.f32 %v158_v31 }
 0x11f   :  { %vm119_vm3 = vmor %vm117_vm2, %vm118_vm1 }
 0x120   :  { %v114_v34 = vsub.f32 1.0, %v113_v33 }
 0x122   :  { %v115_v37 = vmul.f32 %v158_v31, %v114_v34 }
 0x124   :  { %v116_v39 = vadd.f32 %v158_v31, %v115_v37 }
 0x126   :  { %v120_v42 = vsel %vm119_vm3, %v158_v31, %v116_v39 }
 0x127   :  { %v125_v43 = vsel %vm122_vm4, %v124_v40, %v120_v42 }
 0x128   :  { %v126_v44 = vmul.f32 %v125_v43, %v101_v41 }
 0x12a   :  { %v152_v45 = vclamps-f32 %v126_v44, 1.0 }
 0x12c   :  { %v129_v47 = vadd.f32 1.0, %v152_v45 }
 0x12e   :  { %v130_v49 = vmul.f32 %v129_v47, %v87_v46 }
 0x130   :  { %v132_v50 = vadd.f32 %v131_v48, %v130_v49 }
 0x132   :  { %133 = vst [vmem:[#allocation6] sm:$0xff] %v132_v50 }
 0x133   :  { %144 = dma.vmem_to_hbm [thread:$0]  %s140_s1, 128, %s142_s30, [#allocation5]  }
 0x134   :  { %209 = dma.done.wait [#allocation5], 128  }
 0x135   :  { %210 = vsyncadd [#allocation5], 4294967168 }
 0x136   :  { %149 = vsyncpa [#allocation4], 1 }
 0x137   :  { %150 = vsyncpa [#allocation5], 1 }

</bundles_post_ra>
